<compile_context>
chip_gen: v5e
topology: v5e:2x2
jax: 0.10.0
libtpu: 0.0.40
codegen_flags: <defaults>
</compile_context>

<pallas_src>
import functools

import jax
import jax.numpy as jnp
from jax.experimental import pallas as pl
from jax.experimental.pallas import tpu as pltpu

LANES = 128
MAX_BLOCK_ROWS = 4096      # 4096x128 f32 = 2 MiB per stream per buffer


def _tensorcores_per_device():
    """Best-effort TensorCores-per-chip; falls back to 1 (always safe)."""
    try:
        dev = jax.devices()[0]
        for attr in ("num_cores", "core_count"):
            v = getattr(dev, attr, None)
            if isinstance(v, int) and v > 0:
                return min(v, 2)
    except Exception:
        pass
    return 1


# ----------------------------- kernel math -----------------------------------

def _bce_probs(x, t):
    # PyTorch F.binary_cross_entropy clamps each log term at -100; clamp x into
    # [0,1] first so marginally out-of-range probabilities cannot produce NaN.
    x = jnp.clip(x, 0.0, 1.0)
    log_x = jnp.maximum(jnp.log(x), -100.0)
    log_1mx = jnp.maximum(jnp.log(1.0 - x), -100.0)
    return -(t * log_x + (1.0 - t) * log_1mx)


def _bce_logits(x, t):
    # Numerically stable BCE-with-logits: max(x,0) - x*t + log1p(exp(-|x|))
    return jnp.maximum(x, 0.0) - x * t + jnp.log1p(jnp.exp(-jnp.abs(x)))


def _pow_gamma(base, gamma):
    # Clamp tiny negative (1 - pt) so float-gamma pow can't NaN.
    base = jnp.maximum(base, 0.0)
    g = float(gamma)
    if g == int(g) and 0 <= int(g) <= 8:
        gi = int(g)
        if gi == 0:
            return jnp.ones_like(base)
        r = base
        for _ in range(gi - 1):    # multiply chain: no EUP pow for integer gamma
            r = r * base
        return r
    return jnp.power(base, g)


def _focal(x, t, alpha, gamma, logits, binary):
    if binary:
        # Hard {0,1} targets only: fewer EUP transcendentals per element.
        pos = t > 0.5
        if logits:
            z = jnp.where(pos, x, -x)
            e = jnp.exp(-jnp.abs(z))
            bce = jnp.maximum(-z, 0.0) + jnp.log1p(e)        # softplus(-z)
            inv = pl.reciprocal(1.0 + e, approx=True)
            pt = jnp.where(z >= 0.0, inv, e * inv)           # sigmoid(z)
        else:
            xc = jnp.clip(x, 0.0, 1.0)
            pt = jnp.where(pos, xc, 1.0 - xc)
            bce = -jnp.maximum(jnp.log(pt), -100.0)
    else:
        bce = _bce_logits(x, t) if logits else _bce_probs(x, t)
        pt = jnp.exp(-bce)
    return alpha * _pow_gamma(1.0 - pt, gamma) * bce


# ----------------------------- kernels ----------------------------------------

def _focal_reduce_kernel(x_ref, t_ref, out_ref, *, alpha, gamma, logits, binary,
                         n_valid, block_rows, blocks_per_split):
    s = pl.program_id(0)
    j = pl.program_id(1)

    @pl.when(j == 0)
    def _():
        out_ref[...] = jnp.zeros_like(out_ref)

    x = x_ref[...].astype(jnp.float32)
    t = t_ref[...].astype(jnp.float32)
    fl = _focal(x, t, alpha, gamma, logits, binary)

    # Mask ragged / duplicated trailing blocks by global flat element index
    # (n_valid is a static closure constant; logical block index unclamped).
    blk = s * blocks_per_split + j
    row0 = blk * block_rows
    rid = row0 + jax.lax.broadcasted_iota(jnp.int32, fl.shape, 0)
    lid = jax.lax.broadcasted_iota(jnp.int32, fl.shape, 1)
    fl = jnp.where(rid * LANES + lid < n_valid, fl, 0.0)

    # One-vreg-wide accumulation: fold the tile to (1, 128) and accumulate into
    # row 0 of the VMEM-resident (8, 128) output block.
    out_ref[0:1, :] = out_ref[0:1, :] + jnp.sum(fl, axis=0, keepdims=True)


def _focal_elem_kernel(x_ref, t_ref, o_ref, *, alpha, gamma, logits, binary):
    x = x_ref[...].astype(jnp.float32)
    t = t_ref[...].astype(jnp.float32)
    o_ref[...] = _focal(x, t, alpha, gamma, logits, binary).astype(o_ref.dtype)


# ----------------------------- wrapper ----------------------------------------

class FocalLoss:
    def __init__(self, alpha=1, gamma=2, logits=False, reduce=True,
                 binary_targets=False):
        self.alpha = float(alpha)
        self.gamma = float(gamma)
        self.logits = bool(logits)
        self.reduce = bool(reduce)
        # Fast path is exact only for hard {0,1} targets; default off keeps
        # the original module semantics for soft targets.
        self.binary_targets = bool(binary_targets)

    def __call__(self, inputs, targets):
        orig_shape = inputs.shape
        n = int(inputs.size)
        rows = pl.cdiv(n, LANES)
        lane_pad = rows * LANES - n

        # Stream in native dtype; cast to f32 inside the kernel.
        x = inputs.reshape(-1)
        t = targets.reshape(-1)
        if lane_pad:
            # Only when the total size is not a multiple of 128 lanes: minimal
            # tail pad so the flat array views as (rows, 128). Padded elements
            # are masked in-kernel (reduce) / sliced off below (elementwise).
            # TODO(synk): a manual-DMA flat kernel could remove this last copy.
            x = jnp.pad(x, (0, lane_pad))
            t = jnp.pad(t, (0, lane_pad))
        x2 = x.reshape(rows, LANES)
        t2 = t.reshape(rows, LANES)

        # block == full rows dim when it fits (always legal); otherwise a
        # 4096-row tile (multiple of 32 -> safe for int8/bool target streams).
        block_rows = rows if rows <= MAX_BLOCK_ROWS else MAX_BLOCK_ROWS
        num_blocks = pl.cdiv(rows, block_rows)

        if self.reduce:
            n_splits = _tensorcores_per_device() if num_blocks >= 2 else 1
            n_splits = max(1, min(n_splits, num_blocks))
            bps = pl.cdiv(num_blocks, n_splits)

            def in_map(s, j):
                # Clamp so a duplicated trailing block stays in bounds; its
                # contribution is masked to zero in-kernel.
                return (jnp.minimum(s * bps + j, num_blocks - 1), 0)

            in_spec = pl.BlockSpec((block_rows, LANES), in_map)
            kernel = functools.partial(
                _focal_reduce_kernel,
                alpha=self.alpha, gamma=self.gamma, logits=self.logits,
                binary=self.binary_targets, n_valid=n,
                block_rows=block_rows, blocks_per_split=bps)
            partials = pl.pallas_call(
                kernel,
                out_shape=jax.ShapeDtypeStruct((n_splits * 8, LANES), jnp.float32),
                grid=(n_splits, bps),
                in_specs=[in_spec, in_spec],
                out_specs=pl.BlockSpec((8, LANES), lambda s, j: (s, 0)),
                compiler_params=pltpu.CompilerParams(
                    dimension_semantics=("parallel", "arbitrary"),
                    vmem_limit_bytes=32 * 1024 * 1024),
            )(x2, t2)
            return jnp.sum(partials) / n
        else:
            tile_spec = pl.BlockSpec((block_rows, LANES), lambda i: (i, 0))
            kernel = functools.partial(
                _focal_elem_kernel,
                alpha=self.alpha, gamma=self.gamma, logits=self.logits,
                binary=self.binary_targets)
            out = pl.pallas_call(
                kernel,
                # Loss is emitted in the input dtype (bf16 in -> bf16 out).
                out_shape=jax.ShapeDtypeStruct((rows, LANES), inputs.dtype),
                grid=(num_blocks,),
                in_specs=[tile_spec, tile_spec],
                out_specs=tile_spec,
                compiler_params=pltpu.CompilerParams(
                    dimension_semantics=("parallel",),
                    vmem_limit_bytes=32 * 1024 * 1024),
            )(x2, t2)
            if lane_pad:
                return out.reshape(-1)[:n].reshape(orig_shape)
            return out.reshape(orig_shape)


# ----------------------------- reference (pure JAX) ---------------------------

def _focal_loss_ref(inputs, targets, alpha=1.0, gamma=2.0,
                    logits=False, reduce=True):
    x = inputs.astype(jnp.float32)
    t = targets.astype(jnp.float32)
    bce = _bce_logits(x, t) if logits else _bce_probs(x, t)
    pt = jnp.exp(-bce)
    fl = alpha * (1.0 - pt) ** gamma * bce
    return jnp.mean(fl) if reduce else fl


# ----------------------------- demo -------------------------------------------

if __name__ == "__main__":
    key = jax.random.PRNGKey(0)
    k1, k2 = jax.random.split(key)

    # Dense prediction map: NCHW [2, 4, 16, 16] (n = 2048, lane-aligned).
    probs = jax.nn.sigmoid(jax.random.normal(k1, (2, 4, 16, 16), jnp.float32))
    targets = (jax.random.uniform(k2, (2, 4, 16, 16)) > 0.5).astype(jnp.float32)

    # default config: alpha=1, gamma=2, logits=False, reduce=True
    loss = jax.block_until_ready(FocalLoss()(probs, targets))
    ref = _focal_loss_ref(probs, targets)
    assert jnp.allclose(loss, ref, rtol=1e-5, atol=1e-6), (loss, ref)

    # elementwise path (output stays in the input dtype)
    elem = jax.block_until_ready(FocalLoss(reduce=False)(probs, targets))
    elem_ref = _focal_loss_ref(probs, targets, reduce=False)
    assert elem.shape == (2, 4, 16, 16) and elem.dtype == probs.dtype
    assert jnp.allclose(elem, elem_ref, rtol=1e-5, atol=1e-6)

    # logits path on a ragged shape (exercises the in-kernel tail mask)
    logits_in = jax.random.normal(k1, (2, 3, 15, 17), jnp.float32)
    tgt2 = (jax.random.uniform(k2, (2, 3, 15, 17)) > 0.5).astype(jnp.float32)
    loss_l = jax.block_until_ready(FocalLoss(logits=True)(logits_in, tgt2))
    ref_l = _focal_loss_ref(logits_in, tgt2, logits=True)
    assert jnp.allclose(loss_l, ref_l, rtol=1e-5, atol=1e-6), (loss_l, ref_l)

    # ragged elementwise
    elem_l = jax.block_until_ready(
        FocalLoss(logits=True, reduce=False)(logits_in, tgt2))
    elem_l_ref = _focal_loss_ref(logits_in, tgt2, logits=True, reduce=False)
    assert elem_l.shape == logits_in.shape
    assert jnp.allclose(elem_l, elem_l_ref, rtol=1e-5, atol=1e-6)

    # binary-targets fast path (hard {0,1} targets; approx recip -> looser tol)
    loss_b = jax.block_until_ready(
        FocalLoss(logits=True, binary_targets=True)(logits_in, tgt2))
    assert jnp.allclose(loss_b, ref_l, rtol=5e-3, atol=1e-5), (loss_b, ref_l)

    print("KERNEL_OK")
</pallas_src>

<mosaic_0001>
module attributes {stable_mosaic.version = 11 : i64} {
  func.func @_focal_reduce_kernel(%arg0: i32, %arg1: i32, %arg2: memref<16x128xf32, #tpu.memory_space<vmem>>, %arg3: memref<16x128xf32, #tpu.memory_space<vmem>>, %arg4: memref<8x128xf32, #tpu.memory_space<vmem>>) attributes {dimension_semantics = [#tpu.dimension_semantics<parallel>, #tpu.dimension_semantics<arbitrary>], iteration_bounds = array<i64: 1, 1>, scalar_prefetch = 0 : i64, scratch_operands = 0 : i64, tpu.core_type = #tpu.core_type<tc>, window_params = [{transform_indices = @transform_0, window_bounds = array<i64: 16, 128>}, {transform_indices = @transform_1, window_bounds = array<i64: 16, 128>}, {transform_indices = @transform_2, window_bounds = array<i64: 8, 128>}]} {
    %c0_i32 = arith.constant 0 : i32
    %0 = arith.cmpi eq, %arg1, %c0_i32 : i32
    %1 = arith.extui %0 : i1 to i32
    %c0_i32_0 = arith.constant 0 : i32
    %2 = arith.cmpi ne, %1, %c0_i32_0 : i32
    scf.if %2 {
      %cst_20 = arith.constant 0.000000e+00 : f32
      %54 = vector.broadcast %cst_20 : f32 to vector<8x128xf32>
      %c0_21 = arith.constant 0 : index
      %c0_22 = arith.constant 0 : index
      %55 = vector.load %arg4[%c0_21, %c0_22] : memref<8x128xf32, #tpu.memory_space<vmem>>, vector<8x128xf32>
      tpu.vector_store %arg4[%c0_21, %c0_22], %54 {strides = array<i32>} : memref<8x128xf32, #tpu.memory_space<vmem>>, vector<8x128xf32>,
    } else {
    }
    %c0 = arith.constant 0 : index
    %c0_1 = arith.constant 0 : index
    %3 = vector.load %arg2[%c0, %c0_1] : memref<16x128xf32, #tpu.memory_space<vmem>>, vector<16x128xf32>
    %c0_2 = arith.constant 0 : index
    %c0_3 = arith.constant 0 : index
    %4 = vector.load %arg3[%c0_2, %c0_3] : memref<16x128xf32, #tpu.memory_space<vmem>>, vector<16x128xf32>
    %cst = arith.constant 0.000000e+00 : f32
    %cst_4 = arith.constant 1.000000e+00 : f32
    %5 = vector.broadcast %cst : f32 to vector<16x128xf32>
    %6 = arith.maximumf %5, %3 : vector<16x128xf32>
    %7 = vector.broadcast %cst_4 : f32 to vector<16x128xf32>
    %8 = arith.minimumf %7, %6 : vector<16x128xf32>
    %9 = math.log %8 : vector<16x128xf32>
    %cst_5 = arith.constant -1.000000e+02 : f32
    %10 = vector.broadcast %cst_5 : f32 to vector<16x128xf32>
    %11 = arith.maximumf %9, %10 : vector<16x128xf32>
    %cst_6 = arith.constant 1.000000e+00 : f32
    %12 = vector.broadcast %cst_6 : f32 to vector<16x128xf32>
    %13 = arith.subf %12, %8 : vector<16x128xf32>
    %14 = math.log %13 : vector<16x128xf32>
    %cst_7 = arith.constant -1.000000e+02 : f32
    %15 = vector.broadcast %cst_7 : f32 to vector<16x128xf32>
    %16 = arith.maximumf %14, %15 : vector<16x128xf32>
    %17 = arith.mulf %4, %11 : vector<16x128xf32>
    %cst_8 = arith.constant 1.000000e+00 : f32
    %18 = vector.broadcast %cst_8 : f32 to vector<16x128xf32>
    %19 = arith.subf %18, %4 : vector<16x128xf32>
    %20 = arith.mulf %19, %16 : vector<16x128xf32>
    %21 = arith.addf %17, %20 : vector<16x128xf32>
    %cst_9 = arith.constant 0.000000e+00 : f32
    %22 = vector.broadcast %cst_9 : f32 to vector<16x128xf32>
    %23 = arith.subf %22, %21 : vector<16x128xf32>
    %cst_10 = arith.constant 0.000000e+00 : f32
    %24 = vector.broadcast %cst_10 : f32 to vector<16x128xf32>
    %25 = arith.subf %24, %23 : vector<16x128xf32>
    %26 = math.exp %25 : vector<16x128xf32>
    %cst_11 = arith.constant 1.000000e+00 : f32
    %27 = vector.broadcast %cst_11 : f32 to vector<16x128xf32>
    %28 = arith.subf %27, %26 : vector<16x128xf32>
    %cst_12 = arith.constant 0.000000e+00 : f32
    %29 = vector.broadcast %cst_12 : f32 to vector<16x128xf32>
    %30 = arith.maximumf %28, %29 : vector<16x128xf32>
    %31 = arith.mulf %30, %30 : vector<16x128xf32>
    %cst_13 = arith.constant 1.000000e+00 : f32
    %32 = vector.broadcast %cst_13 : f32 to vector<16x128xf32>
    %33 = arith.mulf %32, %31 : vector<16x128xf32>
    %34 = arith.mulf %33, %23 : vector<16x128xf32>
    %c1_i32 = arith.constant 1 : i32
    %35 = arith.muli %arg0, %c1_i32 : i32
    %36 = arith.addi %35, %arg1 : i32
    %c16_i32 = arith.constant 16 : i32
    %37 = arith.muli %36, %c16_i32 : i32
    %38 = tpu.iota {dimensions = array<i32: 0>} : vector<16x128xi32>
    %39 = vector.broadcast %37 : i32 to vector<16x128xi32>
    %40 = arith.addi %39, %38 : vector<16x128xi32>
    %41 = tpu.iota {dimensions = array<i32: 1>} : vector<16x128xi32>
    %c128_i32 = arith.constant 128 : i32
    %42 = vector.broadcast %c128_i32 : i32 to vector<16x128xi32>
    %43 = arith.muli %40, %42 : vector<16x128xi32>
    %44 = arith.addi %43, %41 : vector<16x128xi32>
    %c2048_i32 = arith.constant 2048 : i32
    %45 = vector.broadcast %c2048_i32 : i32 to vector<16x128xi32>
    %46 = arith.cmpi slt, %44, %45 : vector<16x128xi32>
    %cst_14 = arith.constant 0.000000e+00 : f32
    %47 = vector.broadcast %cst_14 : f32 to vector<16x128xf32>
    %48 = arith.select %46, %34, %47 : vector<16x128xi1>, vector<16x128xf32>
    %c0_15 = arith.constant 0 : index
    %c0_16 = arith.constant 0 : index
    %49 = vector.load %arg4[%c0_15, %c0_16] : memref<8x128xf32, #tpu.memory_space<vmem>>, vector<1x128xf32>
    %cst_17 = arith.constant dense<0.000000e+00> : vector<128xf32>
    %50 = vector.multi_reduction <add>, %48, %cst_17 [0] : vector<16x128xf32> to vector<128xf32>
    %51 = vector.shape_cast %50 : vector<128xf32> to vector<1x128xf32>
    %52 = arith.addf %49, %51 : vector<1x128xf32>
    %c0_18 = arith.constant 0 : index
    %c0_19 = arith.constant 0 : index
    %53 = vector.load %arg4[%c0_18, %c0_19] : memref<8x128xf32, #tpu.memory_space<vmem>>, vector<1x128xf32>
    tpu.vector_store %arg4[%c0_18, %c0_19], %52 {strides = array<i32>} : memref<8x128xf32, #tpu.memory_space<vmem>>, vector<1x128xf32>,
    return
  }
  func.func @transform_0(%arg0: i32, %arg1: i32) -> (i32, i32) {
    %c1_i32 = arith.constant 1 : i32
    %0 = arith.muli %arg0, %c1_i32 : i32
    %1 = arith.addi %0, %arg1 : i32
    %c0_i32 = arith.constant 0 : i32
    %2 = arith.minsi %1, %c0_i32 : i32
    %c0_i32_0 = arith.constant 0 : i32
    %c0_i32_1 = arith.constant 0 : i32
    return %2, %c0_i32_0 : i32, i32
  }
  func.func @transform_1(%arg0: i32, %arg1: i32) -> (i32, i32) {
    %c1_i32 = arith.constant 1 : i32
    %0 = arith.muli %arg0, %c1_i32 : i32
    %1 = arith.addi %0, %arg1 : i32
    %c0_i32 = arith.constant 0 : i32
    %2 = arith.minsi %1, %c0_i32 : i32
    %c0_i32_0 = arith.constant 0 : i32
    %c0_i32_1 = arith.constant 0 : i32
    return %2, %c0_i32_0 : i32, i32
  }
  func.func @transform_2(%arg0: i32, %arg1: i32) -> (i32, i32) {
    %c0_i32 = arith.constant 0 : i32
    %c0_i32_0 = arith.constant 0 : i32
    return %arg0, %c0_i32 : i32, i32
  }
}

</mosaic_0001>

<bundles_post_ra>
// kernel: tpu_custom_call.1
= control target key start
LH: loop header
LB: loop body
LE: loop exit
PB: predicated region body
PF: predicated region fallthrough
CT: control target
= control target key end

     0   :  { %7 = vsyncpa [#allocation3], 0  ;;  %s291_s0 = inlined_call_operand.hbm [shape: f32[16,128], index: 0, kind: input, shape index: {}]   ;;  %s292_s1 = inlined_call_operand.hbm [shape: f32[16,128], index: 1, kind: input, shape index: {}]   ;;  %s293_s2 = inlined_call_operand.hbm [shape: f32[8,128], index: 2, kind: output, shape index: {}]  }
   0x1   :  { %8 = vsyncpa [#allocation6], 0 }
   0x2   :  { %9 = vsyncpa [#allocation4], 0  ;;  %s20_s11 = sshll.u32 %s291_s0, 4  ;;  %s261_s12 = smov [#allocation2]   ;;  %s21_s11 = int_to_ptr.hbm [resolvable:$true] %s20_s11 }
   0x3   :  { %s22_s13 = sshll.u32 %s261_s12, 4  ;;  %s39_s16 = sshll.u32 %s292_s1, 4  ;;  %s23_s13 = int_to_ptr.vmem [resolvable:$true] %s22_s13  ;;  %s40_s16 = int_to_ptr.hbm [resolvable:$true] %s39_s16 }
   0x4   :  { %s262_s17 = smov 128   ;;  %s263_s18 = smov 8  }
   0x5   :  { %28 = dma.hbm_to_vmem [thread:$0]  %s21_s11, 256, %s23_s13, [#allocation3], %s262_s17, %s262_s17, %s263_s18  }
   0x6   :  { %s264_s19 = smov [#allocation5]  }
   0x7   :  { %s41_s20 = sshll.u32 %s264_s19, 4  ;;  %s42_s20 = int_to_ptr.vmem [resolvable:$true] %s41_s20 }
   0x8   :  { %47 = dma.hbm_to_vmem [thread:$0]  %s40_s16, 256, %s42_s20, [#allocation6], %s262_s17, %s262_s17, %s263_s18  }
   0x9   :  { %255 = dma.done.wait [#allocation3], 256  }
   0xa   :  { %256 = vsyncadd [#allocation3], 4294967040 }
   0xb   :  { %257 = dma.done.wait [#allocation6], 256  }
   0xc   :  { %258 = vsyncadd [#allocation6], 4294967040  ;;  %v265_v0 = vmov 0.0   ;;  %v69_v1 = vld [vmem:[#allocation2] sm:$0xff]  ;;  %v70_v2 = vld [vmem:[#allocation2 + $0x8] sm:$0xff]  ;;  %v117_v31 = vlaneseq  ;;  %s266_s0 = smov [#allocation7]  }
   0xd   :  { %68 = vst [vmem:[#allocation7] sm:$0xff] %v265_v0  ;;  %v73_v3 = vmax.f32 %v69_v1, 0.0  ;;  %v74_v4 = vmax.f32 %v70_v2, 0.0  ;;  %v71_v10 = vld [vmem:[#allocation5] sm:$0xff]  ;;  %v72_v12 = vld [vmem:[#allocation5 + $0x8] sm:$0xff]  ;;  %s148_s1 = sshll.u32 %s266_s0, 4  ;;  %s149_s1 = int_to_ptr.vmem [resolvable:$true] %s148_s1 }
   0xe   :  { %v93_v19 = vsub.f32 1.0, %v71_v10  ;;  %v94_v22 = vsub.f32 1.0, %v72_v12  ;;  %v118_v36 = vshrl.u32 %v117_v31, 7  ;;  %v124_v40 = vand.u32 127, %v117_v31  ;;  %s150_s23 = sshll.u32 %s293_s2, 4  ;;  %s151_s23 = int_to_ptr.hbm [resolvable:$true] %s150_s23 }
   0xf   :  { %v75_v5 = vmin.f32 %v73_v3, 1.0  ;;  %v76_v6 = vmin.f32 %v74_v4, 1.0 }
  0x10   :  { %v119_v39 = vadd.s32 8, %v118_v36  ;;  %v125_v41 = vmul.u32 128, %v118_v36 }
  0x11   :  { %171 = vlog2.f32 %v75_v5  ;;  %v83_v7 = vsub.f32 1.0, %v75_v5  ;;  %v84_v8 = vsub.f32 1.0, %v76_v6 }
  0x12   :  { %173 = vlog2.f32 %v76_v6  ;;  %v126_v42 = vmul.u32 128, %v119_v39  ;;  %v127_v47 = vadd.s32 %v125_v41, %v124_v40 }
  0x13   :  { %175 = vlog2.f32 %v83_v7 }
  0x14   :  { %177 = vlog2.f32 %v84_v8  ;;  %v128_v49 = vadd.s32 %v126_v42, %v124_v40  ;;  %vm129_vm0 = vcmp.lt.s32.totalorder %v127_v47, 2048  ;;  %v133_v63 = vld [vmem:[#allocation7] sm:$0x1] }
  0x16   :  { %vm130_vm1 = vcmp.lt.s32.totalorder %v128_v49, 2048 }
  0x17   :  { %v172_v9 = vpop.eup %171 }
  0x18   :  { %v174_v11 = vpop.eup %173  ;;  %v78_v13 = vmul.f32 0.6931472, %v172_v9 }
  0x19   :  { %v176_v14 = vpop.eup %175  ;;  %v80_v15 = vmul.f32 0.6931472, %v174_v11 }
  0x1a   :  { %v178_v16 = vpop.eup %177  ;;  %v81_v17 = vmax.f32 %v78_v13, -100.0  ;;  %v86_v18 = vmul.f32 0.6931472, %v176_v14 }
  0x1b   :  { %v82_v20 = vmax.f32 %v80_v15, -100.0  ;;  %v88_v21 = vmul.f32 0.6931472, %v178_v16 }
  0x1c   :  { %v89_v23 = vmax.f32 %v86_v18, -100.0  ;;  %v91_v24 = vmul.f32 %v81_v17, %v71_v10 }
  0x1d   :  { %v90_v25 = vmax.f32 %v88_v21, -100.0  ;;  %v92_v26 = vmul.f32 %v82_v20, %v72_v12 }
  0x1e   :  { %v95_v27 = vmul.f32 %v93_v19, %v89_v23 }
  0x1f   :  { %v96_v28 = vmul.f32 %v94_v22, %v90_v25 }
  0x20   :  { %v97_v29 = vadd.f32 %v95_v27, %v91_v24 }
  0x21   :  { %v98_v30 = vadd.f32 %v96_v28, %v92_v26 }
  0x22   :  { %v99_v32 = vsub.f32 0.0, %v97_v29 }
  0x23   :  { %v100_v33 = vsub.f32 0.0, %v98_v30 }
  0x24   :  { %v101_v34 = vsub.f32 0.0, %v99_v32 }
  0x25   :  { %v102_v35 = vsub.f32 0.0, %v100_v33 }
  0x26   :  { %v103_v37 = vmul.f32 1.442695, %v101_v34 }
  0x27   :  { %v105_v38 = vmul.f32 1.442695, %v102_v35 }
  0x28   :  { %179 = vpow2.f32 %v103_v37 }
  0x29   :  { %181 = vpow2.f32 %v105_v38 }
  0x2e   :  { %v180_v43 = vpop.eup %179 }
  0x2f   :  { %v182_v44 = vpop.eup %181  ;;  %v107_v45 = vsub.f32 1.0, %v180_v43 }
  0x30   :  { %v108_v46 = vsub.f32 1.0, %v182_v44 }
  0x31   :  { %v109_v48 = vmax.f32 %v107_v45, 0.0 }
  0x32   :  { %v110_v50 = vmax.f32 %v108_v46, 0.0 }
  0x33   :  { %v111_v51 = vmul.f32 %v109_v48, %v109_v48 }
  0x34   :  { %v112_v52 = vmul.f32 %v110_v50, %v110_v50 }
  0x35   :  { %v113_v53 = vmul.f32 %v111_v51, %v99_v32 }
  0x36   :  { %v114_v54 = vmul.f32 %v112_v52, %v100_v33 }
  0x37   :  { %v131_v55 = vsel %vm129_vm0, %v113_v53, 0.0 }
  0x38   :  { %v132_v56 = vsel %vm130_vm1, %v114_v54, 0.0 }
  0x39   :  { %v134_v57 = vadd.f32 %v132_v56, %v131_v55 }
  0x3b   :  { %v135_v58 = vrot.slane %v134_v57, 4 }
  0x3d   :  { %v136_v59 = vadd.f32 %v135_v58, %v134_v57 }
  0x3f   :  { %v137_v60 = vrot.slane %v136_v59, 2 }
  0x41   :  { %v138_v61 = vadd.f32 %v137_v60, %v136_v59 }
  0x43   :  { %v139_v62 = vrot.slane %v138_v61, 1 }
  0x45   :  { %v140_v0 = vadd.f32 %v139_v62, %v138_v61 }
  0x47   :  { %v141_v1 = vadd.f32 %v140_v0, %v133_v63 }
  0x49   :  { %142 = vst [vmem:[#allocation7] sm:$0x1] %v141_v1 }
  0x4a   :  { %153 = dma.vmem_to_hbm [thread:$0]  %s149_s1, 128, %s151_s23, [#allocation4]  }
  0x4b   :  { %259 = dma.done.wait [#allocation4], 128  }
  0x4c   :  { %260 = vsyncadd [#allocation4], 4294967168 }
  0x4d   :  { %158 = vsyncpa [#allocation3], 1 }
  0x4e   :  { %159 = vsyncpa [#allocation6], 1 }
  0x4f   :  { %160 = vsyncpa [#allocation4], 1 }

</bundles_post_ra>
